<compile_context>
chip_gen: v7x
topology: tpu7x:2x2x1
jax: 0.10.0
libtpu: 0.0.40
codegen_flags: <defaults>
</compile_context>

<pallas_src>
import math

import jax
import jax.numpy as jnp
from jax.experimental import pallas as pl
from jax.experimental.pallas import tpu as pltpu


_LANE = 128                   # TPU lane width (last dim of a vreg)
_PALLAS_MIN_BYTES = 1 << 18   # below ~256 KiB, let XLA handle the transpose


def _max_tile_for_dtype(dtype) -> int:
    """Per-axis tile cap so a single tile buffer stays at 1-2 MiB."""
    itemsize = jnp.dtype(dtype).itemsize
    if itemsize >= 4:
        return 512            # 512x512 f32  = 1 MiB / buffer
    return 1024               # 1024x1024 bf16 = 2 MiB, int8/fp8 = 1 MiB


def _pick_tile(n: int, max_tile: int) -> int:
    """Pick a lane-aligned tile size for one axis of the 2-D transpose tile."""
    max_tile = max(_LANE, (max_tile // _LANE) * _LANE)
    if n <= _LANE:
        return n                       # block dim == full array dim is legal
    if n % _LANE == 0 and n <= max_tile:
        return n                       # whole axis fits in one aligned tile
    # Largest multiple of 128 <= max_tile that divides n exactly (no partial
    # edge blocks), preferring wide (lane-dense) tiles.
    for t in range(max_tile, _LANE - 1, -_LANE):
        if n % t == 0:
            return t
    # No exact divisor: lane-aligned tile with partial edge blocks.  Pallas
    # pads OOB reads and drops OOB writes; for a pure transpose the padded
    # input region maps exactly onto the dropped output region, so the result
    # stays bit-exact.
    return min(max_tile, pl.cdiv(n, _LANE) * _LANE)


def _transpose_kernel(x_ref, o_ref):
    # x_ref: (TS, TD) VMEM tile, o_ref: (TD, TS) VMEM tile.  The batch dim is
    # squeezed out by the BlockSpecs, so this is a clean 2-D on-chip transpose
    # (XLU vxpose path), with both tiles kept lane-dense.
    o_ref[...] = x_ref[...].T


def pallas_transpose_last2(x, *, max_tile: int | None = None):
    """Swap the last two axes of a 3-D array: (B, S, D) -> (B, D, S)."""
    B, S, D = x.shape
    cap = max_tile if max_tile is not None else _max_tile_for_dtype(x.dtype)
    ts = _pick_tile(S, cap)
    td = _pick_tile(D, cap)
    grid = (B, pl.cdiv(S, ts), pl.cdiv(D, td))
    return pl.pallas_call(
        _transpose_kernel,
        out_shape=jax.ShapeDtypeStruct((B, D, S), x.dtype),
        grid_spec=pltpu.PrefetchScalarGridSpec(
            num_scalar_prefetch=0,
            grid=grid,
            # `None` squeezes the batch dim out of the kernel view (2-D tiles).
            in_specs=[pl.BlockSpec((None, ts, td), lambda b, i, j: (b, i, j))],
            # Output tile indices are swapped: input tile (i, j) lands at (j, i).
            out_specs=pl.BlockSpec((None, td, ts), lambda b, i, j: (b, j, i)),
        ),
        compiler_params=pltpu.CompilerParams(
            # Pure data movement; every grid point is independent, so let the
            # runtime shard the grid across both TensorCores on v7x.
            dimension_semantics=("parallel", "parallel", "parallel"),
        ),
    )(x)


class Transpose:
    """JAX/Pallas mirror of the PyTorch `Transpose(dim0, dim1)` module."""

    def __init__(self, dim0, dim1):
        self.dim0 = dim0
        self.dim1 = dim1

    def __call__(self, x):
        d0, d1 = sorted((self.dim0 % x.ndim, self.dim1 % x.ndim))
        nbytes = x.size * jnp.dtype(x.dtype).itemsize
        if (
            x.ndim >= 2
            and (d0, d1) == (x.ndim - 2, x.ndim - 1)
            and nbytes >= _PALLAS_MIN_BYTES
            # Keep both DMA sides lane-dense: trailing axes narrower than a
            # lane would force masked partial stores -> let XLA fuse those.
            and min(x.shape[-2], x.shape[-1]) >= _LANE
        ):
            lead = x.shape[:-2]
            S, D = x.shape[-2], x.shape[-1]
            batch = math.prod(lead) if lead else 1
            y = pallas_transpose_last2(x.reshape(batch, S, D))
            return y.reshape(*lead, D, S)
        # TODO(synk): non-minor (dim0, dim1) pairs, tiny tensors and sub-lane
        # trailing axes fall back to XLA's native transpose (pure data
        # movement, usually fused into the consumer).
        return jnp.swapaxes(x, self.dim0, self.dim1)


if __name__ == "__main__":
    key = jax.random.PRNGKey(0)
    k1, k2, k3 = jax.random.split(key, 3)

    module = Transpose(1, 2)

    # 1) Tiny input (batch=2, seq=8, hidden=32): routed to the XLA fallback
    #    (below the Pallas size / lane-width thresholds), matching the module
    #    semantics exactly.
    x_small = jax.random.normal(k1, (2, 8, 32), dtype=jnp.float32)
    out_small = jax.block_until_ready(module(x_small))
    assert out_small.shape == (2, 32, 8)
    assert jnp.array_equal(out_small, jnp.swapaxes(x_small, 1, 2))

    # 2) f32 input sized to exercise the tiled Pallas kernel with a real
    #    multi-tile grid: tiles (512, 384) -> grid (2, 2, 2) and the swapped
    #    output index map.
    x = jax.random.normal(k2, (2, 1024, 768), dtype=jnp.float32)
    out = jax.block_until_ready(module(x))
    assert out.shape == (2, 768, 1024)
    assert out.dtype == x.dtype
    assert jnp.array_equal(out, jnp.swapaxes(x, 1, 2))

    # 3) bf16 (packed sublane dtype) through the Pallas kernel directly,
    #    exercising the wider (<=1024) tile cap for 2-byte dtypes.
    x_bf16 = jax.random.normal(k3, (2, 256, 512), dtype=jnp.bfloat16)
    out_bf16 = jax.block_until_ready(pallas_transpose_last2(x_bf16))
    assert out_bf16.shape == (2, 512, 256)
    assert out_bf16.dtype == x_bf16.dtype
    assert jnp.array_equal(out_bf16, jnp.swapaxes(x_bf16, 1, 2))

    print("KERNEL_OK")
</pallas_src>

<mosaic_0001>
module attributes {stable_mosaic.version = 11 : i64} {
  func.func @_transpose_kernel(%arg0: i32, %arg1: i32, %arg2: i32, %arg3: memref<1x512x384xf32, #tpu.memory_space<vmem>>, %arg4: memref<1x384x512xf32, #tpu.memory_space<vmem>>) attributes {dimension_semantics = [#tpu.dimension_semantics<parallel>, #tpu.dimension_semantics<parallel>, #tpu.dimension_semantics<parallel>], iteration_bounds = array<i64: 2, 2, 2>, scalar_prefetch = 0 : i64, scratch_operands = 0 : i64, tpu.core_type = #tpu.core_type<tc>, window_params = [{transform_indices = @transform_0, window_bounds = array<i64: 1, 512, 384>}, {transform_indices = @transform_1, window_bounds = array<i64: 1, 384, 512>}]} {
    %c0 = arith.constant 0 : index
    %c0_0 = arith.constant 0 : index
    %c0_1 = arith.constant 0 : index
    %0 = vector.load %arg3[%c0, %c0_0, %c0_1] : memref<1x512x384xf32, #tpu.memory_space<vmem>>, vector<1x512x384xf32>
    %1 = vector.shape_cast %0 : vector<1x512x384xf32> to vector<512x384xf32>
    %2 = tpu.transpose %1, [1, 0] : vector<512x384xf32> -> vector<384x512xf32>
    %c0_2 = arith.constant 0 : index
    %c0_3 = arith.constant 0 : index
    %c0_4 = arith.constant 0 : index
    %3 = vector.load %arg4[%c0_2, %c0_3, %c0_4] : memref<1x384x512xf32, #tpu.memory_space<vmem>>, vector<1x384x512xf32>
    %4 = vector.shape_cast %3 : vector<1x384x512xf32> to vector<384x512xf32>
    %5 = vector.shape_cast %2 : vector<384x512xf32> to vector<1x384x512xf32>
    tpu.vector_store %arg4[%c0_2, %c0_3, %c0_4], %5 {strides = array<i32>} : memref<1x384x512xf32, #tpu.memory_space<vmem>>, vector<1x384x512xf32>,
    return
  }
  func.func @transform_0(%arg0: i32, %arg1: i32, %arg2: i32) -> (i32, i32, i32) {
    %c0_i32 = arith.constant 0 : i32
    return %arg0, %arg1, %arg2 : i32, i32, i32
  }
  func.func @transform_1(%arg0: i32, %arg1: i32, %arg2: i32) -> (i32, i32, i32) {
    %c0_i32 = arith.constant 0 : i32
    return %arg0, %arg2, %arg1 : i32, i32, i32
  }
}

</mosaic_0001>

<bundles_post_ra>
// kernel: tpu_custom_call.1
= control target key start
LH: loop header
LB: loop body
LE: loop exit
PB: predicated region body
PF: predicated region fallthrough
CT: control target
= control target key end

     0   :  { %6 = vsyncpa [#allocation3], 0  ;;  %s2041_s0 = inlined_call_operand.hbm [shape: f32[2,1024,768], index: 0, kind: input, shape index: {}]   ;;  %s2042_s1 = inlined_call_operand.hbm [shape: f32[2,768,1024], index: 1, kind: output, shape index: {}]  }
   0x1   :  { %8 = vsyncpa [#allocation3 + $0x1], 0 }
   0x2   :  { %9 = vsyncpa [#allocation4], 0 }
   0x3   :  { %11 = vsyncpa [#allocation4 + $0x1], 0  ;;  %s1390_s6 = smov 0   ;;  %s1392_s7 = smov 0  }
   0x4   :  { %s1394_s8 = smov 0   ;;  %s1396_s9 = smov 0  }
   0x5   :  { %s1398_s10 = smov 0   ;;  %s1400_s11 = smov 0  }
   0x6   :  { %s1402_s12 = smov 0   ;;  %s1404_s13 = smov 0  }
   0x7   :  { %s1406_s14 = smov 0   ;;  %s1408_s15 = smov 0  }
   0x8   :  { %s1410_s16 = smov 0   ;;  %s1412_s17 = smov 0  }
   0x9   :  { %s1414_s18 = smov 0  }
   0xa LB: > { %2050 = sst [smem:[#allocation8_spill]] %s1322_s6  ;;  %s1058_s19 = sadd.s32 4294967295, %s1370_s18   ;;  %s1370_s18 = sphi %s1414_s18, %s17_s18   ;;  %s1366_s17 = sphi %s1412_s17, %s2072_s17   ;;  %s1362_s16 = sphi %s1410_s16, %s2082_s16   ;;  %s1358_s15 = sphi %s1408_s15, %s2070_s15   ;;  %s1354_s14 = sphi %s1406_s14, %s2081_s14   ;;  %s1350_s13 = sphi %s1404_s13, %s2080_s13   ;;  %s1346_s12 = sphi %s1402_s12, %s2068_s12   ;;  %s1342_s11 = sphi %s1400_s11, %s2079_s11   ;;  %s1338_s10 = sphi %s1398_s10, %s2078_s10   ;;  %s1334_s9 = sphi %s1396_s9, %s2077_s9   ;;  %s1330_s8 = sphi %s1394_s8, %s2076_s8   ;;  %s1326_s7 = sphi %s1392_s7, %s2075_s7   ;;  %s1322_s6 = sphi %s1390_s6, %s2074_s6  }
   0xb   : > { %2051 = sst [smem:[#allocation9_spill]] %s1358_s15  ;;  %s1059_s20 = sadd.s32 4294967294, %s1370_s18  }
   0xc   : > { %2052 = sst [smem:[#allocation10_spill]] %s1366_s17  ;;  %s29_s21 = sadd.s32 1, %s1358_s15 }
   0xd   : > { %s32_s22 = sadd.s32 1, %s1362_s16  ;;  %p30_p0 = scmp.ge.s32.totalorder %s29_s21, 2 }
   0xe   : > { %s36_s23 = sadd.s32 1, %s1366_s17  ;;  %s47_s24 = sadd.s32 1, %s1342_s11 }
   0xf   : > { %p54_p1 = scmp.ne.s32.totalorder %s1342_s11, %s1338_s10  ;;  %s2084_s21 = smov (%p30_p0, %s29_s21), 0 }
  0x10   : > { %2053 = sst [smem:[#allocation11_spill]] %s2084_s21  ;;  %s2086_s22 = smov (!%p30_p0, %s32_s22), %s1362_s16 }
  0x11   : > { %s43_s25 = ssub.s32 %s1358_s15, %s2084_s21  ;;  %p55_p2 = scmp.eq.s32.totalorder %s1370_s18, 0 }
  0x12   : > { %p34_p3 = scmp.ge.s32.totalorder %s2086_s22, 2  ;;  %p60_p4 = scmp.ne.s32.totalorder %s1338_s10, %s1334_s9 }
  0x13   : > { %p1471_p5 = por %p55_p2, %p54_p1  ;;  %p61_p6 = scmp.eq.s32.totalorder %s1058_s19, 0 }
  0x14   : > { %s2088_s22 = smov (%p34_p3, %s2086_s22), 0  ;;  %s2090_s23 = smov (!%p34_p3, %s36_s23), %s1366_s17 }
  0x15   : > { %2055 = sst [smem:[#allocation12_spill]] %s2088_s22  ;;  %s41_s27 = ssub.s32 %s1362_s16, %s2088_s22 }
  0x16   : > { %p1480_p7 = por %p61_p6, %p60_p4  ;;  %p38_p8 = scmp.ge.s32.totalorder %s2090_s23, 2 }
  0x17   : > { %s77_s29 = sadd.s32 1, %s1330_s8  ;;  %p87_p9 = scmp.ne.s32.totalorder %s1330_s8, %s1326_s7 }
  0x18   : > { %p88_p10 = scmp.eq.s32.totalorder %s1058_s19, 7  ;;  %s2092_s23 = smov (%p38_p8, %s2090_s23), 0 }
  0x19   : > { %2057 = sst [smem:[#allocation13_spill]] %s2092_s23  ;;  %p93_p12 = scmp.ne.s32.totalorder %s1326_s7, %s1322_s6 }
  0x1a   : > { %p1489_p11 = por %p88_p10, %p87_p9  ;;  %s40_s2 = ssub.s32 %s1366_s17, %s2092_s23 }
  0x1b   : > { %p94_p13 = scmp.eq.s32.totalorder %s1059_s20, 7  ;;  %s42_s3 = sor.u32 %s41_s27, %s40_s2 }
  0x1c   : > { %s2058_s30 = scalar_select %p1489_p11, 1, 0 }
  0x1d   : > { %s72_s4 = sor.u32 %s43_s25, %s40_s2  ;;  %s44_s5 = sor.u32 %s43_s25, %s42_s3 }
  0x1e   : > { %s74_s9 = sor.u32 %s72_s4, %s41_s27  ;;  %p45_p0 = scmp.eq.s32.totalorder %s44_s5, 0 }
  0x1f   : > { %p75_p1 = scmp.eq.s32.totalorder %s74_s9, 0  ;;  %p1497_p2 = por %p94_p13, %p93_p12 }
  0x20   : > { %s1504_s22 = scalar_select %p45_p0, %s1342_s11, %s47_s24  }
  0x21   : > { %s2059_s19 = scalar_select %p1497_p2, 1, 0 }
  0x22   : > { %2060 = sst [smem:[#allocation14_spill]] %s1504_s22  ;;  %p1090_p3 = scmp.lt.s32.totalorder %s1370_s18, 8 }
  0x23   : > { %s1507_s21 = scalar_select %p75_p1, %s1330_s8, %s77_s29  }
  0x24   : > { %s114_s23 = sand.u32 1, %s1342_s11   ;;  %s120_s6 = smul.u32 3, %s1358_s15 }
  0x25   : > { %s1072_s20 = smul.u32 1536, %s114_s23  ;;  %p1514_p4 = pnand %p1090_p3, %p1471_p5 }
  0x26   : > { %s1073_s27 = smul.u32 384, %s1362_s16  ;;  %s1528_s26 = scalar_lea.sflag [#allocation3], %s114_s23 }
  0x27   : > { %s1074_s2 = smul.u32 768, %s1366_s17  ;;  %s118_s3 = scalar_lea.vmem [#allocation2], %s1072_s20 }
  0x28   : > { %s130_s4 = sshll.u32 %s118_s3, 4  ;;  %s125_s24 = sadd.s32 %s1073_s27, %s120_s6  ;;  %s1520_s4 = int_to_ptr.vmem [resolvable:$true] %s130_s4 }
  0x29   : > { %s127_s29 = sadd.s32 %s1074_s2, %s125_s24  ;;  %p1204_p8 = pneg %p1514_p4 }
  0x2a   : > { %s1064_s5 = sshll.u32 %s127_s29, 7  ;;  %s1207_s22 = scalar_lea.hbm %s2041_s0, 196608 }
  0x2b   : > { %s1525_s15 = scalar_lea.hbm %s2041_s0, %s1064_s5 }
  0x2c   : > { %s1202_s17 = scalar_lea.hbm %s1525_s15, 24576  ;;  %p1208_p12 = scmp.lt.u32.totalorder %s1525_s15, %s2041_s0 }
  0x2d   : > { %p1203_p6 = scmp.ne.s32.totalorder %s1525_s15, %s1202_s17  ;;  %p1209_p13 = scmp.lt.u32.totalorder %s1207_s22, %s1202_s17 }
  0x2e   : > { %p1211_p1 = scmp.lt.u32.totalorder %s1202_s17, %s1525_s15 }
  0x2f   : > { %p1205_p9 = pnand %p1204_p8, %p1203_p6  ;;  %p1210_p0 = por %p1209_p13, %p1208_p12 }
  0x31   : > { %p1206_p10 = pneg %p1205_p9  ;;  %p1212_p3 = por %p1211_p1, %p1210_p0 }
  0x33   : > { %p1213_p5 = pnand %p1212_p3, %p1206_p10 }
  0x35   : > { %1216 = shalt.err (!%p1213_p5)
}
  0x36   : > { %s1217_s23 = scalar_lea.vmem %s1520_s4, 24576  ;;  %s1372_s3 = smov [#allocation2]  }
  0x37   : > { %p1218_p6 = scmp.ne.s32.totalorder %s1520_s4, %s1217_s23  ;;  %s1222_s24 = sshll.u32 %s1372_s3, 4  ;;  %s1223_s24 = int_to_ptr.vmem [resolvable:$false] %s1222_s24 }
  0x38   : > { %s1224_s29 = scalar_lea.vmem %s1223_s24, 49152  ;;  %p1225_p11 = scmp.lt.s32.totalorder %s1520_s4, %s1223_s24 }
  0x39   : > { %p1220_p9 = pnand %p1218_p6, %p1204_p8  ;;  %p1226_p12 = scmp.lt.s32.totalorder %s1224_s29, %s1217_s23 }
  0x3b   : > { %p1221_p2 = pneg %p1220_p9  ;;  %p1227_p13 = por %p1226_p12, %p1225_p11 }
  0x3d   : > { %p1228_p0 = pnand %p1227_p13, %p1221_p2 }
  0x3f   : > { %1231 = shalt.err (!%p1228_p0)
}
  0x40   : > { %s1373_s17 = smov 768   ;;  %s1374_s5 = smov 384  }
  0x41   : > { %s1375_s9 = smov 24   ;;  %p138_p5 = scmp.lt.s32.totalorder %s1370_s18, 9 }
  0x42   : > { %1085 = dma.hbm_to_vmem [thread:$0]  (!%p1514_p4), %s1525_s15, 24576, %s1520_s4, %s1528_s26, %s1373_s17, %s1374_s5, %s1375_s9  }
  0x43   : > { %p2062_p8 = scmp.ge.s32.totalorder %s1370_s18, 1 }
  0x45   : > { %p139_p10 = pnand %p2062_p8, %p138_p5 }
  0x46   : > { %s144_s6 = sand.u32 (!%p139_p10), 1, %s1338_s10  }
  0x47   : > { %142 = sbr.rel (%p139_p10) target bundleno = 605 (0x25d), region = 24  ;;  %s145_s22 = scalar_lea.sflag (!%p139_p10), [#allocation3], %s144_s6 }
  0x48   : > { %s1075_s20 = smul.u32 (!%p139_p10), 1536, %s144_s6 }
  0x4a   : > { %s1560_s27 = scalar_lea.vmem (!%p139_p10), [#allocation2], %s1075_s20 }
  0x4e   : > { %1313 = dma.done.wait (%p1480_p7), %s145_s22, 24576  }
  0x4f   : > { %1315 = vsyncadd (%p1480_p7), %s145_s22, 4294942720  ;;  %v172_v0 = vld [vmem:[%s1560_s27 + $0x8] sm:$0xff]  ;;  %v171_v1 = vld [vmem:[%s1560_s27] sm:$0xff]  ;;  %s164_s15 = sand.u32 1, %s1326_s7   ;;  %s1071_s4 = smul.u32 384, %s1346_s12 }
  0x50   : > { %395 = vxpose.xlu1.b32.start [1/16] %v172_v0, 128  ;;  %363 = vxpose.xlu0.b32.start [1/16] %v171_v1, 128  ;;  %v175_v2 = vld [vmem:[%s1560_s27 + $0x20] sm:$0xff]  ;;  %v174_v3 = vld [vmem:[%s1560_s27 + $0x18] sm:$0xff]  ;;  %v177_v5 = vld [vmem:[%s1560_s27 + $0x30] sm:$0xff]  ;;  %s1076_s28 = smul.u32 1536, %s164_s15  ;;  %s1066_s26 = sshll.u32 %s1350_s13, 2 }
  0x51   : > { %v178_v4 = vld [vmem:[%s1560_s27 + $0x38] sm:$0xff]  ;;  %v181_v6 = vld [vmem:[%s1560_s27 + $0x50] sm:$0xff]  ;;  %v180_v7 = vld [vmem:[%s1560_s27 + $0x48] sm:$0xff]  ;;  %s1077_s2 = smul.u32 768, %s1354_s14  ;;  %s953_s23 = sadd.s32 %s1071_s4, %s1066_s26 }
  0x52   : > { %v184_v8 = vld [vmem:[%s1560_s27 + $0x68] sm:$0xff]  ;;  %v183_v9 = vld [vmem:[%s1560_s27 + $0x60] sm:$0xff]  ;;  %v186_v11 = vld [vmem:[%s1560_s27 + $0x78] sm:$0xff]  ;;  %s1635_s25 = scalar_lea.vmem [#allocation5], %s1076_s28  ;;  %s1968_s17 = scalar_lea.sflag [#allocation4], %s164_s15 }
  0x53   : > { %v187_v10 = vld [vmem:[%s1560_s27 + $0x80] sm:$0xff]  ;;  %v190_v12 = vld [vmem:[%s1560_s27 + $0x98] sm:$0xff]  ;;  %v189_v13 = vld [vmem:[%s1560_s27 + $0x90] sm:$0xff]  ;;  %s955_s3 = sadd.s32 %s1077_s2, %s953_s23  ;;  %s958_s24 = sshll.u32 %s1635_s25, 4  ;;  %s1962_s24 = int_to_ptr.vmem [resolvable:$true] %s958_s24 }
  0x54   : > { %396 = vxpose.xlu1.b32.cont [2/16] %v175_v2, 128  ;;  %364 = vxpose.xlu0.b32.cont [2/16] %v174_v3, 128  ;;  %v193_v14 = vld [vmem:[%s1560_s27 + $0xb0] sm:$0xff]  ;;  %v192_v15 = vld [vmem:[%s1560_s27 + $0xa8] sm:$0xff]  ;;  %v195_v17 = vld [vmem:[%s1560_s27 + $0xc0] sm:$0xff]  ;;  %s1068_s12 = sshll.u32 %s955_s3, 7  ;;  %s1232_s5 = scalar_lea.vmem %s1962_s24, 24576 }
  0x55   : > { %v196_v16 = vld [vmem:[%s1560_s27 + $0xc8] sm:$0xff]  ;;  %v199_v18 = vld [vmem:[%s1560_s27 + $0xe0] sm:$0xff]  ;;  %v198_v19 = vld [vmem:[%s1560_s27 + $0xd8] sm:$0xff]  ;;  %s1960_s29 = scalar_lea.hbm %s2042_s1, %s1068_s12  ;;  %p1233_p7 = scmp.ne.s32.totalorder %s1962_s24, %s1232_s5 }
  0x56   : > { %v202_v20 = vld [vmem:[%s1560_s27 + $0xf8] sm:$0xff]  ;;  %v201_v21 = vld [vmem:[%s1560_s27 + $0xf0] sm:$0xff]  ;;  %v204_v23 = vld [vmem:[%s1560_s27 + $0x108] sm:$0xff]  ;;  %p2063_p11 = scmp.ne.s32.totalorder %s2058_s30, 0  ;;  %s1376_s9 = smov [#allocation5]  }
  0x57   : > { %v205_v22 = vld [vmem:[%s1560_s27 + $0x110] sm:$0xff]  ;;  %v208_v24 = vld [vmem:[%s1560_s27 + $0x128] sm:$0xff]  ;;  %v207_v25 = vld [vmem:[%s1560_s27 + $0x120] sm:$0xff]  ;;  %s1236_s6 = sshll.u32 %s1376_s9, 4  ;;  %s1237_s6 = int_to_ptr.vmem [resolvable:$false] %s1236_s6 }
  0x58   : > { %397 = vxpose.xlu1.b32.cont [3/16] %v178_v4, 128  ;;  %365 = vxpose.xlu0.b32.cont [3/16] %v177_v5, 128  ;;  %v211_v26 = vld [vmem:[%s1560_s27 + $0x140] sm:$0xff]  ;;  %v210_v27 = vld [vmem:[%s1560_s27 + $0x138] sm:$0xff]  ;;  %v213_v29 = vld [vmem:[%s1560_s27 + $0x150] sm:$0xff]  ;;  %p1234_p2 = pnand %p1233_p7, %p2063_p11  ;;  %s1238_s20 = scalar_lea.vmem %s1237_s6, 49152 }
  0x59   : > { %v214_v28 = vld [vmem:[%s1560_s27 + $0x158] sm:$0xff]  ;;  %v217_v30 = vld [vmem:[%s1560_s27 + $0x170] sm:$0xff]  ;;  %v216_v31 = vld [vmem:[%s1560_s27 + $0x168] sm:$0xff]  ;;  %p1239_p1 = scmp.lt.s32.totalorder %s1962_s24, %s1237_s6  ;;  %p1240_p3 = scmp.lt.s32.totalorder %s1238_s20, %s1232_s5 }
  0x5a   : > { %v219_v32 = vld [vmem:[%s1560_s27 + $0x180] sm:$0xff]  ;;  %v173_v33 = vld [vmem:[%s1560_s27 + $0x10] sm:$0xff]  ;;  %v222_v34 = vld [vmem:[%s1560_s27 + $0x198] sm:$0xff]  ;;  %p1235_p4 = pneg %p1234_p2 }
  0x5b   : > { %v176_v35 = vld [vmem:[%s1560_s27 + $0x28] sm:$0xff]  ;;  %v225_v36 = vld [vmem:[%s1560_s27 + $0x1b0] sm:$0xff]  ;;  %v179_v37 = vld [vmem:[%s1560_s27 + $0x40] sm:$0xff]  ;;  %p1241_p6 = por %p1240_p3, %p1239_p1 }
  0x5c   : > { %398 = vxpose.xlu1.b32.cont [4/16] %v181_v6, 128  ;;  %366 = vxpose.xlu0.b32.cont [4/16] %v180_v7, 128  ;;  %v228_v38 = vld [vmem:[%s1560_s27 + $0x1c8] sm:$0xff]  ;;  %v182_v39 = vld [vmem:[%s1560_s27 + $0x58] sm:$0xff]  ;;  %v231_v40 = vld [vmem:[%s1560_s27 + $0x1e0] sm:$0xff] }
  0x5d   : > { %v185_v41 = vld [vmem:[%s1560_s27 + $0x70] sm:$0xff]  ;;  %v234_v42 = vld [vmem:[%s1560_s27 + $0x1f8] sm:$0xff]  ;;  %v188_v43 = vld [vmem:[%s1560_s27 + $0x88] sm:$0xff]  ;;  %p1242_p9 = pnand %p1241_p6, %p1235_p4 }
  0x5e   : > { %v237_v44 = vld [vmem:[%s1560_s27 + $0x210] sm:$0xff]  ;;  %v191_v45 = vld [vmem:[%s1560_s27 + $0xa0] sm:$0xff]  ;;  %v240_v46 = vld [vmem:[%s1560_s27 + $0x228] sm:$0xff] }
  0x5f   : > { %v194_v47 = vld [vmem:[%s1560_s27 + $0xb8] sm:$0xff]  ;;  %v243_v48 = vld [vmem:[%s1560_s27 + $0x240] sm:$0xff]  ;;  %v197_v49 = vld [vmem:[%s1560_s27 + $0xd0] sm:$0xff] }
  0x60   : > { %399 = vxpose.xlu1.b32.cont [5/16] %v184_v8, 128  ;;  %367 = vxpose.xlu0.b32.cont [5/16] %v183_v9, 128  ;;  %v246_v50 = vld [vmem:[%s1560_s27 + $0x258] sm:$0xff]  ;;  %v200_v51 = vld [vmem:[%s1560_s27 + $0xe8] sm:$0xff]  ;;  %v249_v52 = vld [vmem:[%s1560_s27 + $0x270] sm:$0xff] }
  0x61   : > { %v203_v53 = vld [vmem:[%s1560_s27 + $0x100] sm:$0xff]  ;;  %v252_v54 = vld [vmem:[%s1560_s27 + $0x288] sm:$0xff]  ;;  %v206_v55 = vld [vmem:[%s1560_s27 + $0x118] sm:$0xff] }
  0x62   : > { %v255_v56 = vld [vmem:[%s1560_s27 + $0x2a0] sm:$0xff]  ;;  %v209_v57 = vld [vmem:[%s1560_s27 + $0x130] sm:$0xff]  ;;  %v258_v58 = vld [vmem:[%s1560_s27 + $0x2b8] sm:$0xff] }
  0x63   : > { %v212_v59 = vld [vmem:[%s1560_s27 + $0x148] sm:$0xff]  ;;  %v261_v60 = vld [vmem:[%s1560_s27 + $0x2d0] sm:$0xff]  ;;  %v215_v61 = vld [vmem:[%s1560_s27 + $0x160] sm:$0xff] }
  0x64   : > { %400 = vxpose.xlu1.b32.cont [6/16] %v187_v10, 128  ;;  %368 = vxpose.xlu0.b32.cont [6/16] %v186_v11, 128  ;;  %v264_v62 = vld [vmem:[%s1560_s27 + $0x2e8] sm:$0xff]  ;;  %v218_v63 = vld [vmem:[%s1560_s27 + $0x178] sm:$0xff]  ;;  %v221_v0 = vld [vmem:[%s1560_s27 + $0x190] sm:$0xff] }
  0x65   : > { %v220_v1 = vld [vmem:[%s1560_s27 + $0x188] sm:$0xff]  ;;  %v223_v5 = vld [vmem:[%s1560_s27 + $0x1a0] sm:$0xff]  ;;  %v226_v9 = vld [vmem:[%s1560_s27 + $0x1b8] sm:$0xff] }
  0x66   : > { %v224_v4 = vld [vmem:[%s1560_s27 + $0x1a8] sm:$0xff]  ;;  %v227_v8 = vld [vmem:[%s1560_s27 + $0x1c0] sm:$0xff] }
  0x68   : > { %401 = vxpose.xlu1.b32.cont [7/16] %v190_v12, 128  ;;  %369 = vxpose.xlu0.b32.cont [7/16] %v189_v13, 128  ;;  %v230_v12 = vld [vmem:[%s1560_s27 + $0x1d8] sm:$0xff]  ;;  %v229_v13 = vld [vmem:[%s1560_s27 + $0x1d0] sm:$0xff] }
  0x6c   : > { %402 = vxpose.xlu1.b32.cont [8/16] %v193_v14, 128  ;;  %370 = vxpose.xlu0.b32.cont [8/16] %v192_v15, 128 }
  0x70   : > { %403 = vxpose.xlu1.b32.cont [9/16] %v196_v16, 128  ;;  %371 = vxpose.xlu0.b32.cont [9/16] %v195_v17, 128  ;;  %v233_v16 = vld [vmem:[%s1560_s27 + $0x1f0] sm:$0xff]  ;;  %v232_v17 = vld [vmem:[%s1560_s27 + $0x1e8] sm:$0xff] }
  0x74   : > { %404 = vxpose.xlu1.b32.cont [10/16] %v199_v18, 128  ;;  %372 = vxpose.xlu0.b32.cont [10/16] %v198_v19, 128 }
  0x78   : > { %405 = vxpose.xlu1.b32.cont [11/16] %v202_v20, 128  ;;  %373 = vxpose.xlu0.b32.cont [11/16] %v201_v21, 128  ;;  %v236_v20 = vld [vmem:[%s1560_s27 + $0x208] sm:$0xff]  ;;  %v235_v21 = vld [vmem:[%s1560_s27 + $0x200] sm:$0xff] }
  0x7c   : > { %406 = vxpose.xlu1.b32.cont [12/16] %v205_v22, 128  ;;  %374 = vxpose.xlu0.b32.cont [12/16] %v204_v23, 128 }
  0x80   : > { %407 = vxpose.xlu1.b32.cont [13/16] %v208_v24, 128  ;;  %375 = vxpose.xlu0.b32.cont [13/16] %v207_v25, 128  ;;  %v239_v24 = vld [vmem:[%s1560_s27 + $0x220] sm:$0xff]  ;;  %v238_v25 = vld [vmem:[%s1560_s27 + $0x218] sm:$0xff] }
  0x84   : > { %408 = vxpose.xlu1.b32.cont [14/16] %v211_v26, 128  ;;  %376 = vxpose.xlu0.b32.cont [14/16] %v210_v27, 128 }
  0x88   : > { %409 = vxpose.xlu1.b32.cont [15/16] %v214_v28, 128  ;;  %377 = vxpose.xlu0.b32.cont [15/16] %v213_v29, 128  ;;  %v242_v28 = vld [vmem:[%s1560_s27 + $0x238] sm:$0xff]  ;;  %v241_v29 = vld [vmem:[%s1560_s27 + $0x230] sm:$0xff] }
  0x8c   : > { %410 = vxpose.xlu1.b32.end [16/16] %v217_v30, 128  ;;  %378 = vxpose.xlu0.b32.end [16/16] %v216_v31, 128 }
  0x90   : > { %459 = vxpose.xlu1.b32.start [1/16] %v219_v32, 128  ;;  %427 = vxpose.xlu0.b32.start [1/16] %v173_v33, 128  ;;  %v245_v32 = vld [vmem:[%s1560_s27 + $0x250] sm:$0xff]  ;;  %v244_v33 = vld [vmem:[%s1560_s27 + $0x248] sm:$0xff] }
  0x94   : > { %460 = vxpose.xlu1.b32.cont [2/16] %v222_v34, 128  ;;  %428 = vxpose.xlu0.b32.cont [2/16] %v176_v35, 128 }
  0x98   : > { %461 = vxpose.xlu1.b32.cont [3/16] %v225_v36, 128  ;;  %429 = vxpose.xlu0.b32.cont [3/16] %v179_v37, 128  ;;  %v248_v36 = vld [vmem:[%s1560_s27 + $0x268] sm:$0xff]  ;;  %v247_v37 = vld [vmem:[%s1560_s27 + $0x260] sm:$0xff] }
  0x9c   : > { %462 = vxpose.xlu1.b32.cont [4/16] %v228_v38, 128  ;;  %430 = vxpose.xlu0.b32.cont [4/16] %v182_v39, 128 }
  0xa0   : > { %463 = vxpose.xlu1.b32.cont [5/16] %v231_v40, 128  ;;  %431 = vxpose.xlu0.b32.cont [5/16] %v185_v41, 128  ;;  %v251_v40 = vld [vmem:[%s1560_s27 + $0x280] sm:$0xff]  ;;  %v250_v41 = vld [vmem:[%s1560_s27 + $0x278] sm:$0xff] }
  0xa4   : > { %464 = vxpose.xlu1.b32.cont [6/16] %v234_v42, 128  ;;  %432 = vxpose.xlu0.b32.cont [6/16] %v188_v43, 128 }
  0xa8   : > { %465 = vxpose.xlu1.b32.cont [7/16] %v237_v44, 128  ;;  %433 = vxpose.xlu0.b32.cont [7/16] %v191_v45, 128  ;;  %v254_v44 = vld [vmem:[%s1560_s27 + $0x298] sm:$0xff]  ;;  %v253_v45 = vld [vmem:[%s1560_s27 + $0x290] sm:$0xff] }
  0xac   : > { %466 = vxpose.xlu1.b32.cont [8/16] %v240_v46, 128  ;;  %434 = vxpose.xlu0.b32.cont [8/16] %v194_v47, 128 }
  0xb0   : > { %467 = vxpose.xlu1.b32.cont [9/16] %v243_v48, 128  ;;  %435 = vxpose.xlu0.b32.cont [9/16] %v197_v49, 128  ;;  %v257_v48 = vld [vmem:[%s1560_s27 + $0x2b0] sm:$0xff]  ;;  %v256_v49 = vld [vmem:[%s1560_s27 + $0x2a8] sm:$0xff] }
  0xb4   : > { %468 = vxpose.xlu1.b32.cont [10/16] %v246_v50, 128  ;;  %436 = vxpose.xlu0.b32.cont [10/16] %v200_v51, 128 }
  0xb8   : > { %469 = vxpose.xlu1.b32.cont [11/16] %v249_v52, 128  ;;  %437 = vxpose.xlu0.b32.cont [11/16] %v203_v53, 128  ;;  %v260_v52 = vld [vmem:[%s1560_s27 + $0x2c8] sm:$0xff]  ;;  %v259_v53 = vld [vmem:[%s1560_s27 + $0x2c0] sm:$0xff] }
  0xbc   : > { %470 = vxpose.xlu1.b32.cont [12/16] %v252_v54, 128  ;;  %438 = vxpose.xlu0.b32.cont [12/16] %v206_v55, 128 }
  0xc0   : > { %471 = vxpose.xlu1.b32.cont [13/16] %v255_v56, 128  ;;  %439 = vxpose.xlu0.b32.cont [13/16] %v209_v57, 128  ;;  %v263_v56 = vld [vmem:[%s1560_s27 + $0x2e0] sm:$0xff]  ;;  %v262_v57 = vld [vmem:[%s1560_s27 + $0x2d8] sm:$0xff] }
  0xc4   : > { %472 = vxpose.xlu1.b32.cont [14/16] %v258_v58, 128  ;;  %440 = vxpose.xlu0.b32.cont [14/16] %v212_v59, 128 }
  0xc8   : > { %473 = vxpose.xlu1.b32.cont [15/16] %v261_v60, 128  ;;  %441 = vxpose.xlu0.b32.cont [15/16] %v215_v61, 128  ;;  %v266_v60 = vld [vmem:[%s1560_s27 + $0x2f8] sm:$0xff]  ;;  %v265_v61 = vld [vmem:[%s1560_s27 + $0x2f0] sm:$0xff] }
  0xcc   : > { %474 = vxpose.xlu1.b32.end [16/16] %v264_v62, 128  ;;  %442 = vxpose.xlu0.b32.end [16/16] %v218_v63, 128 }
  0xd0   : > { %523 = vxpose.xlu1.b32.start [1/16] %v221_v0, 128  ;;  %v411_v2 = vpop.trf.xlu1  ;;  %491 = vxpose.xlu0.b32.start [1/16] %v220_v1, 128  ;;  %v379_v3 = vpop.trf.xlu0  ;;  %v268_v0 = vld [vmem:[%s1560_s27 + $0x308] sm:$0xff]  ;;  %v267_v1 = vld [vmem:[%s1560_s27 + $0x300] sm:$0xff] }
  0xd1   : > { %811 = vst [vmem:[%s1635_s25 + $0x200] sm:$0xff] %v411_v2  ;;  %747 = vst [vmem:[%s1635_s25] sm:$0xff] %v379_v3 }
  0xd4   : > { %524 = vxpose.xlu1.b32.cont [2/16] %v224_v4, 128  ;;  %v412_v6 = vpop.trf.xlu1  ;;  %492 = vxpose.xlu0.b32.cont [2/16] %v223_v5, 128  ;;  %v380_v7 = vpop.trf.xlu0  ;;  %v271_v4 = vld [vmem:[%s1560_s27 + $0x320] sm:$0xff]  ;;  %v270_v5 = vld [vmem:[%s1560_s27 + $0x318] sm:$0xff] }
  0xd5   : > { %815 = vst [vmem:[%s1635_s25 + $0x220] sm:$0xff] %v412_v6  ;;  %751 = vst [vmem:[%s1635_s25 + $0x20] sm:$0xff] %v380_v7 }
  0xd8   : > { %525 = vxpose.xlu1.b32.cont [3/16] %v227_v8, 128  ;;  %v413_v10 = vpop.trf.xlu1  ;;  %493 = vxpose.xlu0.b32.cont [3/16] %v226_v9, 128  ;;  %v381_v11 = vpop.trf.xlu0  ;;  %v274_v8 = vld [vmem:[%s1560_s27 + $0x338] sm:$0xff]  ;;  %v273_v9 = vld [vmem:[%s1560_s27 + $0x330] sm:$0xff] }
  0xd9   : > { %819 = vst [vmem:[%s1635_s25 + $0x240] sm:$0xff] %v413_v10  ;;  %755 = vst [vmem:[%s1635_s25 + $0x40] sm:$0xff] %v381_v11 }
  0xdc   : > { %526 = vxpose.xlu1.b32.cont [4/16] %v230_v12, 128  ;;  %v414_v14 = vpop.trf.xlu1  ;;  %494 = vxpose.xlu0.b32.cont [4/16] %v229_v13, 128  ;;  %v382_v15 = vpop.trf.xlu0  ;;  %v277_v12 = vld [vmem:[%s1560_s27 + $0x350] sm:$0xff]  ;;  %v276_v13 = vld [vmem:[%s1560_s27 + $0x348] sm:$0xff] }
  0xdd   : > { %823 = vst [vmem:[%s1635_s25 + $0x260] sm:$0xff] %v414_v14  ;;  %759 = vst [vmem:[%s1635_s25 + $0x60] sm:$0xff] %v382_v15 }
  0xe0   : > { %527 = vxpose.xlu1.b32.cont [5/16] %v233_v16, 128  ;;  %v415_v18 = vpop.trf.xlu1  ;;  %495 = vxpose.xlu0.b32.cont [5/16] %v232_v17, 128  ;;  %v383_v19 = vpop.trf.xlu0  ;;  %v280_v16 = vld [vmem:[%s1560_s27 + $0x368] sm:$0xff]  ;;  %v279_v17 = vld [vmem:[%s1560_s27 + $0x360] sm:$0xff] }
  0xe1   : > { %827 = vst [vmem:[%s1635_s25 + $0x280] sm:$0xff] %v415_v18  ;;  %763 = vst [vmem:[%s1635_s25 + $0x80] sm:$0xff] %v383_v19 }
  0xe4   : > { %528 = vxpose.xlu1.b32.cont [6/16] %v236_v20, 128  ;;  %v416_v22 = vpop.trf.xlu1  ;;  %496 = vxpose.xlu0.b32.cont [6/16] %v235_v21, 128  ;;  %v384_v23 = vpop.trf.xlu0  ;;  %v283_v20 = vld [vmem:[%s1560_s27 + $0x380] sm:$0xff]  ;;  %v282_v21 = vld [vmem:[%s1560_s27 + $0x378] sm:$0xff] }
  0xe5   : > { %831 = vst [vmem:[%s1635_s25 + $0x2a0] sm:$0xff] %v416_v22  ;;  %767 = vst [vmem:[%s1635_s25 + $0xa0] sm:$0xff] %v384_v23 }
  0xe8   : > { %529 = vxpose.xlu1.b32.cont [7/16] %v239_v24, 128  ;;  %v417_v26 = vpop.trf.xlu1  ;;  %497 = vxpose.xlu0.b32.cont [7/16] %v238_v25, 128  ;;  %v385_v27 = vpop.trf.xlu0  ;;  %v286_v24 = vld [vmem:[%s1560_s27 + $0x398] sm:$0xff]  ;;  %v285_v25 = vld [vmem:[%s1560_s27 + $0x390] sm:$0xff] }
  0xe9   : > { %835 = vst [vmem:[%s1635_s25 + $0x2c0] sm:$0xff] %v417_v26  ;;  %771 = vst [vmem:[%s1635_s25 + $0xc0] sm:$0xff] %v385_v27 }
  0xec   : > { %530 = vxpose.xlu1.b32.cont [8/16] %v242_v28, 128  ;;  %v418_v30 = vpop.trf.xlu1  ;;  %498 = vxpose.xlu0.b32.cont [8/16] %v241_v29, 128  ;;  %v386_v31 = vpop.trf.xlu0  ;;  %v289_v28 = vld [vmem:[%s1560_s27 + $0x3b0] sm:$0xff]  ;;  %v288_v29 = vld [vmem:[%s1560_s27 + $0x3a8] sm:$0xff] }
  0xed   : > { %839 = vst [vmem:[%s1635_s25 + $0x2e0] sm:$0xff] %v418_v30  ;;  %775 = vst [vmem:[%s1635_s25 + $0xe0] sm:$0xff] %v386_v31 }
  0xf0   : > { %531 = vxpose.xlu1.b32.cont [9/16] %v245_v32, 128  ;;  %v419_v34 = vpop.trf.xlu1  ;;  %499 = vxpose.xlu0.b32.cont [9/16] %v244_v33, 128  ;;  %v387_v35 = vpop.trf.xlu0  ;;  %v292_v32 = vld [vmem:[%s1560_s27 + $0x3c8] sm:$0xff]  ;;  %v291_v33 = vld [vmem:[%s1560_s27 + $0x3c0] sm:$0xff] }
  0xf1   : > { %843 = vst [vmem:[%s1635_s25 + $0x300] sm:$0xff] %v419_v34  ;;  %779 = vst [vmem:[%s1635_s25 + $0x100] sm:$0xff] %v387_v35 }
  0xf4   : > { %532 = vxpose.xlu1.b32.cont [10/16] %v248_v36, 128  ;;  %v420_v38 = vpop.trf.xlu1  ;;  %500 = vxpose.xlu0.b32.cont [10/16] %v247_v37, 128  ;;  %v388_v39 = vpop.trf.xlu0  ;;  %v295_v36 = vld [vmem:[%s1560_s27 + $0x3e0] sm:$0xff]  ;;  %v294_v37 = vld [vmem:[%s1560_s27 + $0x3d8] sm:$0xff] }
  0xf5   : > { %847 = vst [vmem:[%s1635_s25 + $0x320] sm:$0xff] %v420_v38  ;;  %783 = vst [vmem:[%s1635_s25 + $0x120] sm:$0xff] %v388_v39 }
  0xf8   : > { %533 = vxpose.xlu1.b32.cont [11/16] %v251_v40, 128  ;;  %v421_v42 = vpop.trf.xlu1  ;;  %501 = vxpose.xlu0.b32.cont [11/16] %v250_v41, 128  ;;  %v389_v43 = vpop.trf.xlu0  ;;  %v298_v40 = vld [vmem:[%s1560_s27 + $0x3f8] sm:$0xff]  ;;  %v297_v41 = vld [vmem:[%s1560_s27 + $0x3f0] sm:$0xff] }
  0xf9   : > { %851 = vst [vmem:[%s1635_s25 + $0x340] sm:$0xff] %v421_v42  ;;  %787 = vst [vmem:[%s1635_s25 + $0x140] sm:$0xff] %v389_v43 }
  0xfc   : > { %534 = vxpose.xlu1.b32.cont [12/16] %v254_v44, 128  ;;  %v422_v46 = vpop.trf.xlu1  ;;  %502 = vxpose.xlu0.b32.cont [12/16] %v253_v45, 128  ;;  %v390_v47 = vpop.trf.xlu0  ;;  %v301_v44 = vld [vmem:[%s1560_s27 + $0x410] sm:$0xff]  ;;  %v300_v45 = vld [vmem:[%s1560_s27 + $0x408] sm:$0xff] }
  0xfd   : > { %855 = vst [vmem:[%s1635_s25 + $0x360] sm:$0xff] %v422_v46  ;;  %791 = vst [vmem:[%s1635_s25 + $0x160] sm:$0xff] %v390_v47 }
 0x100   : > { %535 = vxpose.xlu1.b32.cont [13/16] %v257_v48, 128  ;;  %v423_v50 = vpop.trf.xlu1  ;;  %503 = vxpose.xlu0.b32.cont [13/16] %v256_v49, 128  ;;  %v391_v51 = vpop.trf.xlu0  ;;  %v304_v48 = vld [vmem:[%s1560_s27 + $0x428] sm:$0xff]  ;;  %v303_v49 = vld [vmem:[%s1560_s27 + $0x420] sm:$0xff] }
 0x101   : > { %859 = vst [vmem:[%s1635_s25 + $0x380] sm:$0xff] %v423_v50  ;;  %795 = vst [vmem:[%s1635_s25 + $0x180] sm:$0xff] %v391_v51 }
 0x104   : > { %536 = vxpose.xlu1.b32.cont [14/16] %v260_v52, 128  ;;  %v424_v54 = vpop.trf.xlu1  ;;  %504 = vxpose.xlu0.b32.cont [14/16] %v259_v53, 128  ;;  %v392_v55 = vpop.trf.xlu0  ;;  %v307_v52 = vld [vmem:[%s1560_s27 + $0x440] sm:$0xff]  ;;  %v306_v53 = vld [vmem:[%s1560_s27 + $0x438] sm:$0xff] }
 0x105   : > { %863 = vst [vmem:[%s1635_s25 + $0x3a0] sm:$0xff] %v424_v54  ;;  %799 = vst [vmem:[%s1635_s25 + $0x1a0] sm:$0xff] %v392_v55 }
 0x108   : > { %537 = vxpose.xlu1.b32.cont [15/16] %v263_v56, 128  ;;  %v425_v58 = vpop.trf.xlu1  ;;  %505 = vxpose.xlu0.b32.cont [15/16] %v262_v57, 128  ;;  %v393_v59 = vpop.trf.xlu0  ;;  %v310_v56 = vld [vmem:[%s1560_s27 + $0x458] sm:$0xff]  ;;  %v309_v57 = vld [vmem:[%s1560_s27 + $0x450] sm:$0xff] }
 0x109   : > { %867 = vst [vmem:[%s1635_s25 + $0x3c0] sm:$0xff] %v425_v58  ;;  %803 = vst [vmem:[%s1635_s25 + $0x1c0] sm:$0xff] %v393_v59 }
 0x10c   : > { %538 = vxpose.xlu1.b32.end [16/16] %v266_v60, 128  ;;  %v426_v62 = vpop.trf.xlu1  ;;  %506 = vxpose.xlu0.b32.end [16/16] %v265_v61, 128  ;;  %v394_v63 = vpop.trf.xlu0  ;;  %v313_v60 = vld [vmem:[%s1560_s27 + $0x470] sm:$0xff]  ;;  %v312_v61 = vld [vmem:[%s1560_s27 + $0x468] sm:$0xff] }
 0x10d   : > { %871 = vst [vmem:[%s1635_s25 + $0x3e0] sm:$0xff] %v426_v62  ;;  %807 = vst [vmem:[%s1635_s25 + $0x1e0] sm:$0xff] %v394_v63 }
 0x110   : > { %587 = vxpose.xlu1.b32.start [1/16] %v268_v0, 128  ;;  %v475_v2 = vpop.trf.xlu1  ;;  %555 = vxpose.xlu0.b32.start [1/16] %v267_v1, 128  ;;  %v443_v3 = vpop.trf.xlu0  ;;  %v315_v0 = vld [vmem:[%s1560_s27 + $0x480] sm:$0xff]  ;;  %v269_v1 = vld [vmem:[%s1560_s27 + $0x310] sm:$0xff] }
 0x111   : > { %748 = vst [vmem:[%s1635_s25 + $0x8] sm:$0xff] %v475_v2  ;;  %875 = vst [vmem:[%s1635_s25 + $0x400] sm:$0xff] %v443_v3 }
 0x114   : > { %588 = vxpose.xlu1.b32.cont [2/16] %v271_v4, 128  ;;  %v476_v6 = vpop.trf.xlu1  ;;  %556 = vxpose.xlu0.b32.cont [2/16] %v270_v5, 128  ;;  %v444_v7 = vpop.trf.xlu0  ;;  %v318_v4 = vld [vmem:[%s1560_s27 + $0x498] sm:$0xff]  ;;  %v272_v5 = vld [vmem:[%s1560_s27 + $0x328] sm:$0xff] }
 0x115   : > { %752 = vst [vmem:[%s1635_s25 + $0x28] sm:$0xff] %v476_v6  ;;  %879 = vst [vmem:[%s1635_s25 + $0x420] sm:$0xff] %v444_v7 }
 0x118   : > { %589 = vxpose.xlu1.b32.cont [3/16] %v274_v8, 128  ;;  %v477_v10 = vpop.trf.xlu1  ;;  %557 = vxpose.xlu0.b32.cont [3/16] %v273_v9, 128  ;;  %v445_v11 = vpop.trf.xlu0  ;;  %v321_v8 = vld [vmem:[%s1560_s27 + $0x4b0] sm:$0xff]  ;;  %v275_v9 = vld [vmem:[%s1560_s27 + $0x340] sm:$0xff] }
 0x119   : > { %756 = vst [vmem:[%s1635_s25 + $0x48] sm:$0xff] %v477_v10  ;;  %883 = vst [vmem:[%s1635_s25 + $0x440] sm:$0xff] %v445_v11 }
 0x11c   : > { %590 = vxpose.xlu1.b32.cont [4/16] %v277_v12, 128  ;;  %v478_v14 = vpop.trf.xlu1  ;;  %558 = vxpose.xlu0.b32.cont [4/16] %v276_v13, 128  ;;  %v446_v15 = vpop.trf.xlu0  ;;  %v324_v12 = vld [vmem:[%s1560_s27 + $0x4c8] sm:$0xff]  ;;  %v278_v13 = vld [vmem:[%s1560_s27 + $0x358] sm:$0xff] }
 0x11d   : > { %760 = vst [vmem:[%s1635_s25 + $0x68] sm:$0xff] %v478_v14  ;;  %887 = vst [vmem:[%s1635_s25 + $0x460] sm:$0xff] %v446_v15 }
 0x120   : > { %591 = vxpose.xlu1.b32.cont [5/16] %v280_v16, 128  ;;  %v479_v18 = vpop.trf.xlu1  ;;  %559 = vxpose.xlu0.b32.cont [5/16] %v279_v17, 128  ;;  %v447_v19 = vpop.trf.xlu0  ;;  %v327_v16 = vld [vmem:[%s1560_s27 + $0x4e0] sm:$0xff]  ;;  %v281_v17 = vld [vmem:[%s1560_s27 + $0x370] sm:$0xff] }
 0x121   : > { %764 = vst [vmem:[%s1635_s25 + $0x88] sm:$0xff] %v479_v18  ;;  %891 = vst [vmem:[%s1635_s25 + $0x480] sm:$0xff] %v447_v19 }
 0x124   : > { %592 = vxpose.xlu1.b32.cont [6/16] %v283_v20, 128  ;;  %v480_v22 = vpop.trf.xlu1  ;;  %560 = vxpose.xlu0.b32.cont [6/16] %v282_v21, 128  ;;  %v448_v23 = vpop.trf.xlu0  ;;  %v330_v20 = vld [vmem:[%s1560_s27 + $0x4f8] sm:$0xff]  ;;  %v284_v21 = vld [vmem:[%s1560_s27 + $0x388] sm:$0xff] }
 0x125   : > { %768 = vst [vmem:[%s1635_s25 + $0xa8] sm:$0xff] %v480_v22  ;;  %895 = vst [vmem:[%s1635_s25 + $0x4a0] sm:$0xff] %v448_v23 }
 0x128   : > { %593 = vxpose.xlu1.b32.cont [7/16] %v286_v24, 128  ;;  %v481_v26 = vpop.trf.xlu1  ;;  %561 = vxpose.xlu0.b32.cont [7/16] %v285_v25, 128  ;;  %v449_v27 = vpop.trf.xlu0  ;;  %v333_v24 = vld [vmem:[%s1560_s27 + $0x510] sm:$0xff]  ;;  %v287_v25 = vld [vmem:[%s1560_s27 + $0x3a0] sm:$0xff] }
 0x129   : > { %772 = vst [vmem:[%s1635_s25 + $0xc8] sm:$0xff] %v481_v26  ;;  %899 = vst [vmem:[%s1635_s25 + $0x4c0] sm:$0xff] %v449_v27 }
 0x12c   : > { %594 = vxpose.xlu1.b32.cont [8/16] %v289_v28, 128  ;;  %v482_v30 = vpop.trf.xlu1  ;;  %562 = vxpose.xlu0.b32.cont [8/16] %v288_v29, 128  ;;  %v450_v31 = vpop.trf.xlu0  ;;  %v336_v28 = vld [vmem:[%s1560_s27 + $0x528] sm:$0xff]  ;;  %v290_v29 = vld [vmem:[%s1560_s27 + $0x3b8] sm:$0xff] }
 0x12d   : > { %776 = vst [vmem:[%s1635_s25 + $0xe8] sm:$0xff] %v482_v30  ;;  %903 = vst [vmem:[%s1635_s25 + $0x4e0] sm:$0xff] %v450_v31 }
 0x130   : > { %595 = vxpose.xlu1.b32.cont [9/16] %v292_v32, 128  ;;  %v483_v34 = vpop.trf.xlu1  ;;  %563 = vxpose.xlu0.b32.cont [9/16] %v291_v33, 128  ;;  %v451_v35 = vpop.trf.xlu0  ;;  %v339_v32 = vld [vmem:[%s1560_s27 + $0x540] sm:$0xff]  ;;  %v293_v33 = vld [vmem:[%s1560_s27 + $0x3d0] sm:$0xff] }
 0x131   : > { %780 = vst [vmem:[%s1635_s25 + $0x108] sm:$0xff] %v483_v34  ;;  %907 = vst [vmem:[%s1635_s25 + $0x500] sm:$0xff] %v451_v35 }
 0x134   : > { %596 = vxpose.xlu1.b32.cont [10/16] %v295_v36, 128  ;;  %v484_v38 = vpop.trf.xlu1  ;;  %564 = vxpose.xlu0.b32.cont [10/16] %v294_v37, 128  ;;  %v452_v39 = vpop.trf.xlu0  ;;  %v342_v36 = vld [vmem:[%s1560_s27 + $0x558] sm:$0xff]  ;;  %v296_v37 = vld [vmem:[%s1560_s27 + $0x3e8] sm:$0xff] }
 0x135   : > { %784 = vst [vmem:[%s1635_s25 + $0x128] sm:$0xff] %v484_v38  ;;  %911 = vst [vmem:[%s1635_s25 + $0x520] sm:$0xff] %v452_v39 }
 0x138   : > { %597 = vxpose.xlu1.b32.cont [11/16] %v298_v40, 128  ;;  %v485_v42 = vpop.trf.xlu1  ;;  %565 = vxpose.xlu0.b32.cont [11/16] %v297_v41, 128  ;;  %v453_v43 = vpop.trf.xlu0  ;;  %v345_v40 = vld [vmem:[%s1560_s27 + $0x570] sm:$0xff]  ;;  %v299_v41 = vld [vmem:[%s1560_s27 + $0x400] sm:$0xff] }
 0x139   : > { %788 = vst [vmem:[%s1635_s25 + $0x148] sm:$0xff] %v485_v42  ;;  %915 = vst [vmem:[%s1635_s25 + $0x540] sm:$0xff] %v453_v43 }
 0x13c   : > { %598 = vxpose.xlu1.b32.cont [12/16] %v301_v44, 128  ;;  %v486_v46 = vpop.trf.xlu1  ;;  %566 = vxpose.xlu0.b32.cont [12/16] %v300_v45, 128  ;;  %v454_v47 = vpop.trf.xlu0  ;;  %v348_v44 = vld [vmem:[%s1560_s27 + $0x588] sm:$0xff]  ;;  %v302_v45 = vld [vmem:[%s1560_s27 + $0x418] sm:$0xff] }
 0x13d   : > { %792 = vst [vmem:[%s1635_s25 + $0x168] sm:$0xff] %v486_v46  ;;  %919 = vst [vmem:[%s1635_s25 + $0x560] sm:$0xff] %v454_v47 }
 0x140   : > { %599 = vxpose.xlu1.b32.cont [13/16] %v304_v48, 128  ;;  %v487_v50 = vpop.trf.xlu1  ;;  %567 = vxpose.xlu0.b32.cont [13/16] %v303_v49, 128  ;;  %v455_v51 = vpop.trf.xlu0  ;;  %v351_v48 = vld [vmem:[%s1560_s27 + $0x5a0] sm:$0xff]  ;;  %v305_v49 = vld [vmem:[%s1560_s27 + $0x430] sm:$0xff] }
 0x141   : > { %796 = vst [vmem:[%s1635_s25 + $0x188] sm:$0xff] %v487_v50  ;;  %923 = vst [vmem:[%s1635_s25 + $0x580] sm:$0xff] %v455_v51 }
 0x144   : > { %600 = vxpose.xlu1.b32.cont [14/16] %v307_v52, 128  ;;  %v488_v54 = vpop.trf.xlu1  ;;  %568 = vxpose.xlu0.b32.cont [14/16] %v306_v53, 128  ;;  %v456_v55 = vpop.trf.xlu0  ;;  %v354_v52 = vld [vmem:[%s1560_s27 + $0x5b8] sm:$0xff]  ;;  %v308_v53 = vld [vmem:[%s1560_s27 + $0x448] sm:$0xff] }
 0x145   : > { %800 = vst [vmem:[%s1635_s25 + $0x1a8] sm:$0xff] %v488_v54  ;;  %927 = vst [vmem:[%s1635_s25 + $0x5a0] sm:$0xff] %v456_v55 }
 0x148   : > { %601 = vxpose.xlu1.b32.cont [15/16] %v310_v56, 128  ;;  %v489_v58 = vpop.trf.xlu1  ;;  %569 = vxpose.xlu0.b32.cont [15/16] %v309_v57, 128  ;;  %v457_v59 = vpop.trf.xlu0  ;;  %v357_v56 = vld [vmem:[%s1560_s27 + $0x5d0] sm:$0xff]  ;;  %v311_v57 = vld [vmem:[%s1560_s27 + $0x460] sm:$0xff] }
 0x149   : > { %804 = vst [vmem:[%s1635_s25 + $0x1c8] sm:$0xff] %v489_v58  ;;  %931 = vst [vmem:[%s1635_s25 + $0x5c0] sm:$0xff] %v457_v59 }
 0x14c   : > { %602 = vxpose.xlu1.b32.end [16/16] %v313_v60, 128  ;;  %v490_v62 = vpop.trf.xlu1  ;;  %570 = vxpose.xlu0.b32.end [16/16] %v312_v61, 128  ;;  %v458_v63 = vpop.trf.xlu0  ;;  %v360_v60 = vld [vmem:[%s1560_s27 + $0x5e8] sm:$0xff]  ;;  %v314_v61 = vld [vmem:[%s1560_s27 + $0x478] sm:$0xff] }
 0x14d   : > { %808 = vst [vmem:[%s1635_s25 + $0x1e8] sm:$0xff] %v490_v62  ;;  %935 = vst [vmem:[%s1635_s25 + $0x5e0] sm:$0xff] %v458_v63 }
 0x150   : > { %651 = vxpose.xlu1.b32.start [1/16] %v315_v0, 128  ;;  %v539_v2 = vpop.trf.xlu1  ;;  %619 = vxpose.xlu0.b32.start [1/16] %v269_v1, 128  ;;  %v507_v3 = vpop.trf.xlu0  ;;  %v317_v0 = vld [vmem:[%s1560_s27 + $0x490] sm:$0xff]  ;;  %v316_v1 = vld [vmem:[%s1560_s27 + $0x488] sm:$0xff] }
 0x151   : > { %876 = vst [vmem:[%s1635_s25 + $0x408] sm:$0xff] %v539_v2  ;;  %812 = vst [vmem:[%s1635_s25 + $0x208] sm:$0xff] %v507_v3 }
 0x154   : > { %652 = vxpose.xlu1.b32.cont [2/16] %v318_v4, 128  ;;  %v540_v6 = vpop.trf.xlu1  ;;  %620 = vxpose.xlu0.b32.cont [2/16] %v272_v5, 128  ;;  %v508_v7 = vpop.trf.xlu0  ;;  %v320_v4 = vld [vmem:[%s1560_s27 + $0x4a8] sm:$0xff]  ;;  %v319_v5 = vld [vmem:[%s1560_s27 + $0x4a0] sm:$0xff] }
 0x155   : > { %880 = vst [vmem:[%s1635_s25 + $0x428] sm:$0xff] %v540_v6  ;;  %816 = vst [vmem:[%s1635_s25 + $0x228] sm:$0xff] %v508_v7 }
 0x158   : > { %653 = vxpose.xlu1.b32.cont [3/16] %v321_v8, 128  ;;  %v541_v10 = vpop.trf.xlu1  ;;  %621 = vxpose.xlu0.b32.cont [3/16] %v275_v9, 128  ;;  %v509_v11 = vpop.trf.xlu0  ;;  %v323_v8 = vld [vmem:[%s1560_s27 + $0x4c0] sm:$0xff]  ;;  %v322_v9 = vld [vmem:[%s1560_s27 + $0x4b8] sm:$0xff] }
 0x159   : > { %884 = vst [vmem:[%s1635_s25 + $0x448] sm:$0xff] %v541_v10  ;;  %820 = vst [vmem:[%s1635_s25 + $0x248] sm:$0xff] %v509_v11 }
 0x15c   : > { %654 = vxpose.xlu1.b32.cont [4/16] %v324_v12, 128  ;;  %v542_v14 = vpop.trf.xlu1  ;;  %622 = vxpose.xlu0.b32.cont [4/16] %v278_v13, 128  ;;  %v510_v15 = vpop.trf.xlu0  ;;  %v326_v12 = vld [vmem:[%s1560_s27 + $0x4d8] sm:$0xff]  ;;  %v325_v13 = vld [vmem:[%s1560_s27 + $0x4d0] sm:$0xff] }
 0x15d   : > { %888 = vst [vmem:[%s1635_s25 + $0x468] sm:$0xff] %v542_v14  ;;  %824 = vst [vmem:[%s1635_s25 + $0x268] sm:$0xff] %v510_v15 }
 0x160   : > { %655 = vxpose.xlu1.b32.cont [5/16] %v327_v16, 128  ;;  %v543_v18 = vpop.trf.xlu1  ;;  %623 = vxpose.xlu0.b32.cont [5/16] %v281_v17, 128  ;;  %v511_v19 = vpop.trf.xlu0  ;;  %v329_v16 = vld [vmem:[%s1560_s27 + $0x4f0] sm:$0xff]  ;;  %v328_v17 = vld [vmem:[%s1560_s27 + $0x4e8] sm:$0xff] }
 0x161   : > { %892 = vst [vmem:[%s1635_s25 + $0x488] sm:$0xff] %v543_v18  ;;  %828 = vst [vmem:[%s1635_s25 + $0x288] sm:$0xff] %v511_v19 }
 0x164   : > { %656 = vxpose.xlu1.b32.cont [6/16] %v330_v20, 128  ;;  %v544_v22 = vpop.trf.xlu1  ;;  %624 = vxpose.xlu0.b32.cont [6/16] %v284_v21, 128  ;;  %v512_v23 = vpop.trf.xlu0  ;;  %v332_v20 = vld [vmem:[%s1560_s27 + $0x508] sm:$0xff]  ;;  %v331_v21 = vld [vmem:[%s1560_s27 + $0x500] sm:$0xff] }
 0x165   : > { %896 = vst [vmem:[%s1635_s25 + $0x4a8] sm:$0xff] %v544_v22  ;;  %832 = vst [vmem:[%s1635_s25 + $0x2a8] sm:$0xff] %v512_v23 }
 0x168   : > { %657 = vxpose.xlu1.b32.cont [7/16] %v333_v24, 128  ;;  %v545_v26 = vpop.trf.xlu1  ;;  %625 = vxpose.xlu0.b32.cont [7/16] %v287_v25, 128  ;;  %v513_v27 = vpop.trf.xlu0  ;;  %v335_v24 = vld [vmem:[%s1560_s27 + $0x520] sm:$0xff]  ;;  %v334_v25 = vld [vmem:[%s1560_s27 + $0x518] sm:$0xff] }
 0x169   : > { %900 = vst [vmem:[%s1635_s25 + $0x4c8] sm:$0xff] %v545_v26  ;;  %836 = vst [vmem:[%s1635_s25 + $0x2c8] sm:$0xff] %v513_v27 }
 0x16c   : > { %658 = vxpose.xlu1.b32.cont [8/16] %v336_v28, 128  ;;  %v546_v30 = vpop.trf.xlu1  ;;  %626 = vxpose.xlu0.b32.cont [8/16] %v290_v29, 128  ;;  %v514_v31 = vpop.trf.xlu0  ;;  %v338_v28 = vld [vmem:[%s1560_s27 + $0x538] sm:$0xff]  ;;  %v337_v29 = vld [vmem:[%s1560_s27 + $0x530] sm:$0xff] }
 0x16d   : > { %904 = vst [vmem:[%s1635_s25 + $0x4e8] sm:$0xff] %v546_v30  ;;  %840 = vst [vmem:[%s1635_s25 + $0x2e8] sm:$0xff] %v514_v31 }
 0x170   : > { %659 = vxpose.xlu1.b32.cont [9/16] %v339_v32, 128  ;;  %v547_v34 = vpop.trf.xlu1  ;;  %627 = vxpose.xlu0.b32.cont [9/16] %v293_v33, 128  ;;  %v515_v35 = vpop.trf.xlu0  ;;  %v341_v32 = vld [vmem:[%s1560_s27 + $0x550] sm:$0xff]  ;;  %v340_v33 = vld [vmem:[%s1560_s27 + $0x548] sm:$0xff] }
 0x171   : > { %908 = vst [vmem:[%s1635_s25 + $0x508] sm:$0xff] %v547_v34  ;;  %844 = vst [vmem:[%s1635_s25 + $0x308] sm:$0xff] %v515_v35 }
 0x174   : > { %660 = vxpose.xlu1.b32.cont [10/16] %v342_v36, 128  ;;  %v548_v38 = vpop.trf.xlu1  ;;  %628 = vxpose.xlu0.b32.cont [10/16] %v296_v37, 128  ;;  %v516_v39 = vpop.trf.xlu0  ;;  %v344_v36 = vld [vmem:[%s1560_s27 + $0x568] sm:$0xff]  ;;  %v343_v37 = vld [vmem:[%s1560_s27 + $0x560] sm:$0xff] }
 0x175   : > { %912 = vst [vmem:[%s1635_s25 + $0x528] sm:$0xff] %v548_v38  ;;  %848 = vst [vmem:[%s1635_s25 + $0x328] sm:$0xff] %v516_v39 }
 0x178   : > { %661 = vxpose.xlu1.b32.cont [11/16] %v345_v40, 128  ;;  %v549_v42 = vpop.trf.xlu1  ;;  %629 = vxpose.xlu0.b32.cont [11/16] %v299_v41, 128  ;;  %v517_v43 = vpop.trf.xlu0  ;;  %v347_v40 = vld [vmem:[%s1560_s27 + $0x580] sm:$0xff]  ;;  %v346_v41 = vld [vmem:[%s1560_s27 + $0x578] sm:$0xff] }
 0x179   : > { %916 = vst [vmem:[%s1635_s25 + $0x548] sm:$0xff] %v549_v42  ;;  %852 = vst [vmem:[%s1635_s25 + $0x348] sm:$0xff] %v517_v43 }
 0x17c   : > { %662 = vxpose.xlu1.b32.cont [12/16] %v348_v44, 128  ;;  %v550_v46 = vpop.trf.xlu1  ;;  %630 = vxpose.xlu0.b32.cont [12/16] %v302_v45, 128  ;;  %v518_v47 = vpop.trf.xlu0  ;;  %v350_v44 = vld [vmem:[%s1560_s27 + $0x598] sm:$0xff]  ;;  %v349_v45 = vld [vmem:[%s1560_s27 + $0x590] sm:$0xff] }
 0x17d   : > { %920 = vst [vmem:[%s1635_s25 + $0x568] sm:$0xff] %v550_v46  ;;  %856 = vst [vmem:[%s1635_s25 + $0x368] sm:$0xff] %v518_v47 }
 0x180   : > { %663 = vxpose.xlu1.b32.cont [13/16] %v351_v48, 128  ;;  %v551_v50 = vpop.trf.xlu1  ;;  %631 = vxpose.xlu0.b32.cont [13/16] %v305_v49, 128  ;;  %v519_v51 = vpop.trf.xlu0  ;;  %v353_v48 = vld [vmem:[%s1560_s27 + $0x5b0] sm:$0xff]  ;;  %v352_v49 = vld [vmem:[%s1560_s27 + $0x5a8] sm:$0xff] }
 0x181   : > { %924 = vst [vmem:[%s1635_s25 + $0x588] sm:$0xff] %v551_v50  ;;  %860 = vst [vmem:[%s1635_s25 + $0x388] sm:$0xff] %v519_v51 }
 0x184   : > { %664 = vxpose.xlu1.b32.cont [14/16] %v354_v52, 128  ;;  %v552_v54 = vpop.trf.xlu1  ;;  %632 = vxpose.xlu0.b32.cont [14/16] %v308_v53, 128  ;;  %v520_v55 = vpop.trf.xlu0  ;;  %v356_v52 = vld [vmem:[%s1560_s27 + $0x5c8] sm:$0xff]  ;;  %v355_v53 = vld [vmem:[%s1560_s27 + $0x5c0] sm:$0xff] }
 0x185   : > { %928 = vst [vmem:[%s1635_s25 + $0x5a8] sm:$0xff] %v552_v54  ;;  %864 = vst [vmem:[%s1635_s25 + $0x3a8] sm:$0xff] %v520_v55 }
 0x188   : > { %665 = vxpose.xlu1.b32.cont [15/16] %v357_v56, 128  ;;  %v553_v58 = vpop.trf.xlu1  ;;  %633 = vxpose.xlu0.b32.cont [15/16] %v311_v57, 128  ;;  %v521_v59 = vpop.trf.xlu0  ;;  %v359_v56 = vld [vmem:[%s1560_s27 + $0x5e0] sm:$0xff]  ;;  %v358_v57 = vld [vmem:[%s1560_s27 + $0x5d8] sm:$0xff] }
 0x189   : > { %932 = vst [vmem:[%s1635_s25 + $0x5c8] sm:$0xff] %v553_v58  ;;  %868 = vst [vmem:[%s1635_s25 + $0x3c8] sm:$0xff] %v521_v59 }
 0x18c   : > { %666 = vxpose.xlu1.b32.end [16/16] %v360_v60, 128  ;;  %v554_v62 = vpop.trf.xlu1  ;;  %634 = vxpose.xlu0.b32.end [16/16] %v314_v61, 128  ;;  %v522_v63 = vpop.trf.xlu0  ;;  %v362_v60 = vld [vmem:[%s1560_s27 + $0x5f8] sm:$0xff]  ;;  %v361_v61 = vld [vmem:[%s1560_s27 + $0x5f0] sm:$0xff] }
 0x18d   : > { %936 = vst [vmem:[%s1635_s25 + $0x5e8] sm:$0xff] %v554_v62  ;;  %872 = vst [vmem:[%s1635_s25 + $0x3e8] sm:$0xff] %v522_v63 }
 0x190   : > { %715 = vxpose.xlu1.b32.start [1/16] %v317_v0, 128  ;;  %v603_v2 = vpop.trf.xlu1  ;;  %683 = vxpose.xlu0.b32.start [1/16] %v316_v1, 128  ;;  %v571_v3 = vpop.trf.xlu0 }
 0x191   : > { %813 = vst [vmem:[%s1635_s25 + $0x210] sm:$0xff] %v603_v2  ;;  %749 = vst [vmem:[%s1635_s25 + $0x10] sm:$0xff] %v571_v3 }
 0x194   : > { %716 = vxpose.xlu1.b32.cont [2/16] %v320_v4, 128  ;;  %v604_v6 = vpop.trf.xlu1  ;;  %684 = vxpose.xlu0.b32.cont [2/16] %v319_v5, 128  ;;  %v572_v7 = vpop.trf.xlu0 }
 0x195   : > { %817 = vst [vmem:[%s1635_s25 + $0x230] sm:$0xff] %v604_v6  ;;  %753 = vst [vmem:[%s1635_s25 + $0x30] sm:$0xff] %v572_v7 }
 0x198   : > { %717 = vxpose.xlu1.b32.cont [3/16] %v323_v8, 128  ;;  %v605_v10 = vpop.trf.xlu1  ;;  %685 = vxpose.xlu0.b32.cont [3/16] %v322_v9, 128  ;;  %v573_v11 = vpop.trf.xlu0 }
 0x199   : > { %821 = vst [vmem:[%s1635_s25 + $0x250] sm:$0xff] %v605_v10  ;;  %757 = vst [vmem:[%s1635_s25 + $0x50] sm:$0xff] %v573_v11 }
 0x19c   : > { %718 = vxpose.xlu1.b32.cont [4/16] %v326_v12, 128  ;;  %v606_v14 = vpop.trf.xlu1  ;;  %686 = vxpose.xlu0.b32.cont [4/16] %v325_v13, 128  ;;  %v574_v15 = vpop.trf.xlu0 }
 0x19d   : > { %825 = vst [vmem:[%s1635_s25 + $0x270] sm:$0xff] %v606_v14  ;;  %761 = vst [vmem:[%s1635_s25 + $0x70] sm:$0xff] %v574_v15 }
 0x1a0   : > { %719 = vxpose.xlu1.b32.cont [5/16] %v329_v16, 128  ;;  %v607_v18 = vpop.trf.xlu1  ;;  %687 = vxpose.xlu0.b32.cont [5/16] %v328_v17, 128  ;;  %v575_v19 = vpop.trf.xlu0 }
 0x1a1   : > { %829 = vst [vmem:[%s1635_s25 + $0x290] sm:$0xff] %v607_v18  ;;  %765 = vst [vmem:[%s1635_s25 + $0x90] sm:$0xff] %v575_v19 }
 0x1a4   : > { %720 = vxpose.xlu1.b32.cont [6/16] %v332_v20, 128  ;;  %v608_v22 = vpop.trf.xlu1  ;;  %688 = vxpose.xlu0.b32.cont [6/16] %v331_v21, 128  ;;  %v576_v23 = vpop.trf.xlu0 }
 0x1a5   : > { %833 = vst [vmem:[%s1635_s25 + $0x2b0] sm:$0xff] %v608_v22  ;;  %769 = vst [vmem:[%s1635_s25 + $0xb0] sm:$0xff] %v576_v23 }
 0x1a8   : > { %721 = vxpose.xlu1.b32.cont [7/16] %v335_v24, 128  ;;  %v609_v26 = vpop.trf.xlu1  ;;  %689 = vxpose.xlu0.b32.cont [7/16] %v334_v25, 128  ;;  %v577_v27 = vpop.trf.xlu0 }
 0x1a9   : > { %837 = vst [vmem:[%s1635_s25 + $0x2d0] sm:$0xff] %v609_v26  ;;  %773 = vst [vmem:[%s1635_s25 + $0xd0] sm:$0xff] %v577_v27 }
 0x1ac   : > { %722 = vxpose.xlu1.b32.cont [8/16] %v338_v28, 128  ;;  %v610_v30 = vpop.trf.xlu1  ;;  %690 = vxpose.xlu0.b32.cont [8/16] %v337_v29, 128  ;;  %v578_v31 = vpop.trf.xlu0 }
 0x1ad   : > { %841 = vst [vmem:[%s1635_s25 + $0x2f0] sm:$0xff] %v610_v30  ;;  %777 = vst [vmem:[%s1635_s25 + $0xf0] sm:$0xff] %v578_v31 }
 0x1b0   : > { %723 = vxpose.xlu1.b32.cont [9/16] %v341_v32, 128  ;;  %v611_v34 = vpop.trf.xlu1  ;;  %691 = vxpose.xlu0.b32.cont [9/16] %v340_v33, 128  ;;  %v579_v35 = vpop.trf.xlu0 }
 0x1b1   : > { %845 = vst [vmem:[%s1635_s25 + $0x310] sm:$0xff] %v611_v34  ;;  %781 = vst [vmem:[%s1635_s25 + $0x110] sm:$0xff] %v579_v35 }
 0x1b4   : > { %724 = vxpose.xlu1.b32.cont [10/16] %v344_v36, 128  ;;  %v612_v38 = vpop.trf.xlu1  ;;  %692 = vxpose.xlu0.b32.cont [10/16] %v343_v37, 128  ;;  %v580_v39 = vpop.trf.xlu0 }
 0x1b5   : > { %849 = vst [vmem:[%s1635_s25 + $0x330] sm:$0xff] %v612_v38  ;;  %785 = vst [vmem:[%s1635_s25 + $0x130] sm:$0xff] %v580_v39 }
 0x1b8   : > { %725 = vxpose.xlu1.b32.cont [11/16] %v347_v40, 128  ;;  %v613_v42 = vpop.trf.xlu1  ;;  %693 = vxpose.xlu0.b32.cont [11/16] %v346_v41, 128  ;;  %v581_v43 = vpop.trf.xlu0 }
 0x1b9   : > { %853 = vst [vmem:[%s1635_s25 + $0x350] sm:$0xff] %v613_v42  ;;  %789 = vst [vmem:[%s1635_s25 + $0x150] sm:$0xff] %v581_v43 }
 0x1bc   : > { %726 = vxpose.xlu1.b32.cont [12/16] %v350_v44, 128  ;;  %v614_v46 = vpop.trf.xlu1  ;;  %694 = vxpose.xlu0.b32.cont [12/16] %v349_v45, 128  ;;  %v582_v47 = vpop.trf.xlu0 }
 0x1bd   : > { %857 = vst [vmem:[%s1635_s25 + $0x370] sm:$0xff] %v614_v46  ;;  %793 = vst [vmem:[%s1635_s25 + $0x170] sm:$0xff] %v582_v47 }
 0x1c0   : > { %727 = vxpose.xlu1.b32.cont [13/16] %v353_v48, 128  ;;  %v615_v50 = vpop.trf.xlu1  ;;  %695 = vxpose.xlu0.b32.cont [13/16] %v352_v49, 128  ;;  %v583_v51 = vpop.trf.xlu0 }
 0x1c1   : > { %861 = vst [vmem:[%s1635_s25 + $0x390] sm:$0xff] %v615_v50  ;;  %797 = vst [vmem:[%s1635_s25 + $0x190] sm:$0xff] %v583_v51 }
 0x1c4   : > { %728 = vxpose.xlu1.b32.cont [14/16] %v356_v52, 128  ;;  %v616_v54 = vpop.trf.xlu1  ;;  %696 = vxpose.xlu0.b32.cont [14/16] %v355_v53, 128  ;;  %v584_v55 = vpop.trf.xlu0 }
 0x1c5   : > { %865 = vst [vmem:[%s1635_s25 + $0x3b0] sm:$0xff] %v616_v54  ;;  %801 = vst [vmem:[%s1635_s25 + $0x1b0] sm:$0xff] %v584_v55 }
 0x1c8   : > { %729 = vxpose.xlu1.b32.cont [15/16] %v359_v56, 128  ;;  %v617_v58 = vpop.trf.xlu1  ;;  %697 = vxpose.xlu0.b32.cont [15/16] %v358_v57, 128  ;;  %v585_v59 = vpop.trf.xlu0 }
 0x1c9   : > { %869 = vst [vmem:[%s1635_s25 + $0x3d0] sm:$0xff] %v617_v58  ;;  %805 = vst [vmem:[%s1635_s25 + $0x1d0] sm:$0xff] %v585_v59 }
 0x1cc   : > { %730 = vxpose.xlu1.b32.end [16/16] %v362_v60, 128  ;;  %v618_v62 = vpop.trf.xlu1  ;;  %698 = vxpose.xlu0.b32.end [16/16] %v361_v61, 128  ;;  %v586_v63 = vpop.trf.xlu0 }
 0x1cd   : > { %873 = vst [vmem:[%s1635_s25 + $0x3f0] sm:$0xff] %v618_v62  ;;  %809 = vst [vmem:[%s1635_s25 + $0x1f0] sm:$0xff] %v586_v63 }
 0x1d0   : > { %v667_v0 = vpop.trf.xlu1  ;;  %v635_v1 = vpop.trf.xlu0 }
 0x1d1   : > { %750 = vst [vmem:[%s1635_s25 + $0x18] sm:$0xff] %v667_v0  ;;  %877 = vst [vmem:[%s1635_s25 + $0x410] sm:$0xff] %v635_v1 }
 0x1d4   : > { %v668_v2 = vpop.trf.xlu1  ;;  %v636_v3 = vpop.trf.xlu0 }
 0x1d5   : > { %754 = vst [vmem:[%s1635_s25 + $0x38] sm:$0xff] %v668_v2  ;;  %881 = vst [vmem:[%s1635_s25 + $0x430] sm:$0xff] %v636_v3 }
 0x1d8   : > { %v669_v4 = vpop.trf.xlu1  ;;  %v637_v5 = vpop.trf.xlu0 }
 0x1d9   : > { %758 = vst [vmem:[%s1635_s25 + $0x58] sm:$0xff] %v669_v4  ;;  %885 = vst [vmem:[%s1635_s25 + $0x450] sm:$0xff] %v637_v5 }
 0x1dc   : > { %v670_v6 = vpop.trf.xlu1  ;;  %v638_v7 = vpop.trf.xlu0 }
 0x1dd   : > { %762 = vst [vmem:[%s1635_s25 + $0x78] sm:$0xff] %v670_v6  ;;  %889 = vst [vmem:[%s1635_s25 + $0x470] sm:$0xff] %v638_v7 }
 0x1e0   : > { %v671_v8 = vpop.trf.xlu1  ;;  %v639_v9 = vpop.trf.xlu0 }
 0x1e1   : > { %766 = vst [vmem:[%s1635_s25 + $0x98] sm:$0xff] %v671_v8  ;;  %893 = vst [vmem:[%s1635_s25 + $0x490] sm:$0xff] %v639_v9 }
 0x1e4   : > { %v672_v10 = vpop.trf.xlu1  ;;  %v640_v11 = vpop.trf.xlu0 }
 0x1e5   : > { %770 = vst [vmem:[%s1635_s25 + $0xb8] sm:$0xff] %v672_v10  ;;  %897 = vst [vmem:[%s1635_s25 + $0x4b0] sm:$0xff] %v640_v11 }
 0x1e8   : > { %v673_v12 = vpop.trf.xlu1  ;;  %v641_v13 = vpop.trf.xlu0 }
 0x1e9   : > { %774 = vst [vmem:[%s1635_s25 + $0xd8] sm:$0xff] %v673_v12  ;;  %901 = vst [vmem:[%s1635_s25 + $0x4d0] sm:$0xff] %v641_v13 }
 0x1ec   : > { %v674_v14 = vpop.trf.xlu1  ;;  %v642_v15 = vpop.trf.xlu0 }
 0x1ed   : > { %778 = vst [vmem:[%s1635_s25 + $0xf8] sm:$0xff] %v674_v14  ;;  %905 = vst [vmem:[%s1635_s25 + $0x4f0] sm:$0xff] %v642_v15 }
 0x1f0   : > { %v675_v16 = vpop.trf.xlu1  ;;  %v643_v17 = vpop.trf.xlu0 }
 0x1f1   : > { %782 = vst [vmem:[%s1635_s25 + $0x118] sm:$0xff] %v675_v16  ;;  %909 = vst [vmem:[%s1635_s25 + $0x510] sm:$0xff] %v643_v17 }
 0x1f4   : > { %v676_v18 = vpop.trf.xlu1  ;;  %v644_v19 = vpop.trf.xlu0 }
 0x1f5   : > { %786 = vst [vmem:[%s1635_s25 + $0x138] sm:$0xff] %v676_v18  ;;  %913 = vst [vmem:[%s1635_s25 + $0x530] sm:$0xff] %v644_v19 }
 0x1f8   : > { %v677_v20 = vpop.trf.xlu1  ;;  %v645_v21 = vpop.trf.xlu0 }
 0x1f9   : > { %790 = vst [vmem:[%s1635_s25 + $0x158] sm:$0xff] %v677_v20  ;;  %917 = vst [vmem:[%s1635_s25 + $0x550] sm:$0xff] %v645_v21 }
 0x1fc   : > { %v678_v22 = vpop.trf.xlu1  ;;  %v646_v23 = vpop.trf.xlu0 }
 0x1fd   : > { %794 = vst [vmem:[%s1635_s25 + $0x178] sm:$0xff] %v678_v22  ;;  %921 = vst [vmem:[%s1635_s25 + $0x570] sm:$0xff] %v646_v23 }
 0x200   : > { %v679_v24 = vpop.trf.xlu1  ;;  %v647_v25 = vpop.trf.xlu0 }
 0x201   : > { %798 = vst [vmem:[%s1635_s25 + $0x198] sm:$0xff] %v679_v24  ;;  %925 = vst [vmem:[%s1635_s25 + $0x590] sm:$0xff] %v647_v25 }
 0x204   : > { %v680_v26 = vpop.trf.xlu1  ;;  %v648_v27 = vpop.trf.xlu0 }
 0x205   : > { %802 = vst [vmem:[%s1635_s25 + $0x1b8] sm:$0xff] %v680_v26  ;;  %929 = vst [vmem:[%s1635_s25 + $0x5b0] sm:$0xff] %v648_v27 }
 0x208   : > { %v681_v28 = vpop.trf.xlu1  ;;  %v649_v29 = vpop.trf.xlu0 }
 0x209   : > { %806 = vst [vmem:[%s1635_s25 + $0x1d8] sm:$0xff] %v681_v28  ;;  %933 = vst [vmem:[%s1635_s25 + $0x5d0] sm:$0xff] %v649_v29 }
 0x20c   : > { %v682_v30 = vpop.trf.xlu1  ;;  %v650_v31 = vpop.trf.xlu0 }
 0x20d   : > { %810 = vst [vmem:[%s1635_s25 + $0x1f8] sm:$0xff] %v682_v30  ;;  %937 = vst [vmem:[%s1635_s25 + $0x5f0] sm:$0xff] %v650_v31 }
 0x210   : > { %v731_v32 = vpop.trf.xlu1  ;;  %v699_v33 = vpop.trf.xlu0 }
 0x211   : > { %878 = vst [vmem:[%s1635_s25 + $0x418] sm:$0xff] %v731_v32  ;;  %814 = vst [vmem:[%s1635_s25 + $0x218] sm:$0xff] %v699_v33 }
 0x214   : > { %v732_v34 = vpop.trf.xlu1  ;;  %v700_v35 = vpop.trf.xlu0 }
 0x215   : > { %882 = vst [vmem:[%s1635_s25 + $0x438] sm:$0xff] %v732_v34  ;;  %818 = vst [vmem:[%s1635_s25 + $0x238] sm:$0xff] %v700_v35 }
 0x218   : > { %v733_v36 = vpop.trf.xlu1  ;;  %v701_v37 = vpop.trf.xlu0 }
 0x219   : > { %886 = vst [vmem:[%s1635_s25 + $0x458] sm:$0xff] %v733_v36  ;;  %822 = vst [vmem:[%s1635_s25 + $0x258] sm:$0xff] %v701_v37 }
 0x21c   : > { %v734_v38 = vpop.trf.xlu1  ;;  %v702_v39 = vpop.trf.xlu0 }
 0x21d   : > { %890 = vst [vmem:[%s1635_s25 + $0x478] sm:$0xff] %v734_v38  ;;  %826 = vst [vmem:[%s1635_s25 + $0x278] sm:$0xff] %v702_v39 }
 0x220   : > { %v735_v40 = vpop.trf.xlu1  ;;  %v703_v41 = vpop.trf.xlu0 }
 0x221   : > { %894 = vst [vmem:[%s1635_s25 + $0x498] sm:$0xff] %v735_v40  ;;  %830 = vst [vmem:[%s1635_s25 + $0x298] sm:$0xff] %v703_v41 }
 0x224   : > { %v736_v42 = vpop.trf.xlu1  ;;  %v704_v43 = vpop.trf.xlu0 }
 0x225   : > { %898 = vst [vmem:[%s1635_s25 + $0x4b8] sm:$0xff] %v736_v42  ;;  %834 = vst [vmem:[%s1635_s25 + $0x2b8] sm:$0xff] %v704_v43 }
 0x228   : > { %v737_v44 = vpop.trf.xlu1  ;;  %v705_v45 = vpop.trf.xlu0 }
 0x229   : > { %902 = vst [vmem:[%s1635_s25 + $0x4d8] sm:$0xff] %v737_v44  ;;  %838 = vst [vmem:[%s1635_s25 + $0x2d8] sm:$0xff] %v705_v45 }
 0x22c   : > { %v738_v46 = vpop.trf.xlu1  ;;  %v706_v47 = vpop.trf.xlu0 }
 0x22d   : > { %906 = vst [vmem:[%s1635_s25 + $0x4f8] sm:$0xff] %v738_v46  ;;  %842 = vst [vmem:[%s1635_s25 + $0x2f8] sm:$0xff] %v706_v47 }
 0x230   : > { %v739_v48 = vpop.trf.xlu1  ;;  %v707_v49 = vpop.trf.xlu0 }
 0x231   : > { %910 = vst [vmem:[%s1635_s25 + $0x518] sm:$0xff] %v739_v48  ;;  %846 = vst [vmem:[%s1635_s25 + $0x318] sm:$0xff] %v707_v49 }
 0x234   : > { %v740_v50 = vpop.trf.xlu1  ;;  %v708_v51 = vpop.trf.xlu0 }
 0x235   : > { %914 = vst [vmem:[%s1635_s25 + $0x538] sm:$0xff] %v740_v50  ;;  %850 = vst [vmem:[%s1635_s25 + $0x338] sm:$0xff] %v708_v51 }
 0x238   : > { %v741_v52 = vpop.trf.xlu1  ;;  %v709_v53 = vpop.trf.xlu0 }
 0x239   : > { %918 = vst [vmem:[%s1635_s25 + $0x558] sm:$0xff] %v741_v52  ;;  %854 = vst [vmem:[%s1635_s25 + $0x358] sm:$0xff] %v709_v53 }
 0x23c   : > { %v742_v54 = vpop.trf.xlu1  ;;  %v710_v55 = vpop.trf.xlu0 }
 0x23d   : > { %922 = vst [vmem:[%s1635_s25 + $0x578] sm:$0xff] %v742_v54  ;;  %858 = vst [vmem:[%s1635_s25 + $0x378] sm:$0xff] %v710_v55 }
 0x240   : > { %v743_v56 = vpop.trf.xlu1  ;;  %v711_v57 = vpop.trf.xlu0 }
 0x241   : > { %926 = vst [vmem:[%s1635_s25 + $0x598] sm:$0xff] %v743_v56  ;;  %862 = vst [vmem:[%s1635_s25 + $0x398] sm:$0xff] %v711_v57 }
 0x244   : > { %v744_v58 = vpop.trf.xlu1  ;;  %v712_v59 = vpop.trf.xlu0 }
 0x245   : > { %930 = vst [vmem:[%s1635_s25 + $0x5b8] sm:$0xff] %v744_v58  ;;  %866 = vst [vmem:[%s1635_s25 + $0x3b8] sm:$0xff] %v712_v59 }
 0x248   : > { %v745_v60 = vpop.trf.xlu1  ;;  %v713_v61 = vpop.trf.xlu0 }
 0x249   : > { %934 = vst [vmem:[%s1635_s25 + $0x5d8] sm:$0xff] %v745_v60  ;;  %870 = vst [vmem:[%s1635_s25 + $0x3d8] sm:$0xff] %v713_v61 }
 0x24c   : > { %v746_v62 = vpop.trf.xlu1  ;;  %v714_v63 = vpop.trf.xlu0 }
 0x24d   : > { %938 = vst [vmem:[%s1635_s25 + $0x5f8] sm:$0xff] %v746_v62  ;;  %874 = vst [vmem:[%s1635_s25 + $0x3f8] sm:$0xff] %v714_v63 }
 0x24e   : > { %1245 = shalt.err (!%p1242_p9)
}
 0x24f   : > { %s1246_s22 = scalar_lea.hbm %s1960_s29, 24576  ;;  %s1250_s28 = scalar_lea.hbm %s2042_s1, 196608 }
 0x250   : > { %p1247_p12 = scmp.ne.s32.totalorder %s1960_s29, %s1246_s22  ;;  %p1251_p5 = scmp.lt.u32.totalorder %s1960_s29, %s2042_s1 }
 0x251   : > { %p1252_p8 = scmp.lt.u32.totalorder %s1250_s28, %s1246_s22  ;;  %p1254_p7 = scmp.lt.u32.totalorder %s1246_s22, %s1960_s29 }
 0x252   : > { %p1248_p13 = pnand %p1247_p12, %p2063_p11 }
 0x253   : > { %p1253_p10 = por %p1252_p8, %p1251_p5 }
 0x254   : > { %p1249_p0 = pneg %p1248_p13 }
 0x255   : > { %p1255_p2 = por %p1254_p7, %p1253_p10 }
 0x257   : > { %p1256_p4 = pnand %p1255_p2, %p1249_p0 }
 0x259   : > { %1259 = shalt.err (!%p1256_p4)
}
 0x25a   : > { %s1377_s26 = smov 512   ;;  %s1378_s2 = smov 1024  }
 0x25b   : > { %s1379_s23 = smov 32  }
 0x25c   : > { %1080 = dma.vmem_to_hbm [thread:$0]  (%p2063_p11), %s1962_s24, 24576, %s1960_s29, %s1968_s17, %s1377_s26, %s1378_s2, %s1379_s23  }
 0x25d PF: > { %s2064_s3 = sld [smem:[#allocation8_spill]]  ;;  %p1091_p1 = scmp.ge.s32.totalorder %s1370_s18, 2 }
 0x25e   : > { %p2065_p3 = scmp.ne.s32.totalorder %s2059_s19, 0 }
 0x260   : > { %p1087_p6 = pnand %p1091_p1, %p2065_p3 }
 0x263   : > { %s973_s12 = sand.u32 1, %s2064_s3  }
 0x264   : > { %s974_s13 = scalar_lea.sflag [#allocation4], %s973_s12 }
 0x265   : > { %1317 = dma.done.wait (!%p1087_p6), %s974_s13, 24576  }
 0x266   : > { %1319 = vsyncadd (!%p1087_p6), %s974_s13, 4294942720  ;;  %s17_s18 = sadd.s32 1, %s1370_s18   ;;  %s2067_s30 = sld [smem:[#allocation14_spill]] }
 0x267   : > { %p1997_p9 = scmp.ge.s32.totalorder %s17_s18, 10   ;;  %s2068_s12 = sld [smem:[#allocation9_spill]] }
 0x268   : > { %s2069_s24 = sld [smem:[#allocation10_spill]]  ;;  %s2070_s15 = sld [smem:[#allocation11_spill]] }
 0x269   : > { %s2071_s19 = sld [smem:[#allocation12_spill]]  ;;  %s2072_s17 = sld [smem:[#allocation13_spill]] }
 0x26a   : > { %s2074_s6 = smov %s1326_s7  ;;  %s2075_s7 = smov %s1330_s8 }
 0x26b   : > { %s2076_s8 = smov %s1507_s21  ;;  %s2077_s9 = smov %s1338_s10 }
 0x26c   : > { %s2078_s10 = smov %s1342_s11  ;;  %s2079_s11 = smov %s2067_s30 }
 0x26d   : > { %s2080_s13 = smov %s1362_s16  ;;  %16 = sbr.rel (!%p1997_p9) target bundleno = 10 (0xa), region = 69 }
 0x26e   : > { %s2081_s14 = smov %s2069_s24 }
 0x26f   : > { %s2082_s16 = smov %s2071_s19 }
 0x274   :  { %979 = vsyncpa [#allocation3], 1 }
 0x275   :  { %981 = vsyncpa [#allocation3 + $0x1], 1 }
 0x276   :  { %982 = vsyncpa [#allocation4], 1 }
 0x277   :  { %984 = vsyncpa [#allocation4 + $0x1], 1 }

</bundles_post_ra>
